<compile_context>
chip_gen: v5e
topology: v5e:2x2
jax: 0.10.0
libtpu: 0.0.40
codegen_flags: <defaults>
</compile_context>

<pallas_src>
import math
from functools import partial

import jax
import jax.numpy as jnp
from jax.experimental import pallas as pl
from jax.experimental.pallas import tpu as pltpu


def _pair(v):
    if isinstance(v, (tuple, list)):
        return (int(v[0]), int(v[1]))
    return (int(v), int(v))


def _samepad2d_kernel(x_ref, o_ref, *, pad_top, pad_bottom, pad_left, pad_right):
    """Assemble the padded block in registers and store it once, aligned at 0."""
    x = x_ref[...]                      # (TILE_P, H, W)
    p, h, _ = x.shape
    dt = x.dtype

    # Pad the last (lane) dim: W -> W + pad_left + pad_right.
    if pad_left or pad_right:
        parts = []
        if pad_left:
            parts.append(jnp.zeros((p, h, pad_left), dt))
        parts.append(x)
        if pad_right:
            parts.append(jnp.zeros((p, h, pad_right), dt))
        x = jnp.concatenate(parts, axis=2)

    # Pad the second-to-last (sublane) dim: H -> H + pad_top + pad_bottom.
    if pad_top or pad_bottom:
        w_out = x.shape[2]
        parts = []
        if pad_top:
            parts.append(jnp.zeros((p, pad_top, w_out), dt))
        parts.append(x)
        if pad_bottom:
            parts.append(jnp.zeros((p, pad_bottom, w_out), dt))
        x = jnp.concatenate(parts, axis=1)

    # Single full-block store at offset 0 (tile-aligned, unmasked rows).
    o_ref[...] = x


def same_pad_2d(x, kernel_size, stride):
    """Pallas implementation of SamePad2d.forward for NCHW input `x`."""
    kernel_size = _pair(kernel_size)
    stride = _pair(stride)
    B, C, H, W = x.shape

    # --- exact replication of the PyTorch arithmetic (names swapped on purpose) ---
    in_width = H   # input.size()[2]
    in_height = W  # input.size()[3]
    out_width = math.ceil(float(in_width) / float(stride[0]))
    out_height = math.ceil(float(in_height) / float(stride[1]))
    pad_along_width = max((out_width - 1) * stride[0] + kernel_size[0] - in_width, 0)
    pad_along_height = max((out_height - 1) * stride[1] + kernel_size[1] - in_height, 0)
    pad_left = int(math.floor(pad_along_width / 2))
    pad_top = int(math.floor(pad_along_height / 2))
    pad_right = int(pad_along_width - pad_left)
    pad_bottom = int(pad_along_height - pad_top)

    # F.pad(input, (pad_left, pad_right, pad_top, pad_bottom)):
    #   last dim (W) gets (pad_left, pad_right); dim2 (H) gets (pad_top, pad_bottom).
    out_H = H + pad_top + pad_bottom
    out_W = W + pad_left + pad_right

    # Early-out: no padding required -> return the input (no kernel launch).
    if pad_left == 0 and pad_right == 0 and pad_top == 0 and pad_bottom == 0:
        return x

    dtype_bytes = jnp.dtype(x.dtype).itemsize
    P = B * C
    plane_in_bytes = H * W * dtype_bytes
    plane_out_bytes = out_H * out_W * dtype_bytes

    # Tile over flattened planes: biggest TILE_P whose double-buffered
    # (input + output) blocks fit comfortably under a 32 MiB scoped-VMEM limit
    # (safe on v5e / v6e / v7x), targeting ~4 MiB input blocks per grid step.
    target_in_block_bytes = 4 * 1024 * 1024
    vmem_budget = 24 * 1024 * 1024   # headroom below the 32 MiB scoped limit
    max_by_budget = max(1, vmem_budget // (2 * (plane_in_bytes + plane_out_bytes)))
    tile_p = max(1, min(P, target_in_block_bytes // plane_in_bytes, max_by_budget))
    # Keep at least 2 grid steps when possible so both v7x TensorCores get work.
    if tile_p >= P and P >= 2:
        tile_p = (P + 1) // 2
    num_steps = (P + tile_p - 1) // tile_p

    x_flat = x.reshape(P, H, W)

    kernel = partial(_samepad2d_kernel,
                     pad_top=pad_top, pad_bottom=pad_bottom,
                     pad_left=pad_left, pad_right=pad_right)

    bytes_accessed = P * (plane_in_bytes + plane_out_bytes)

    out_flat = pl.pallas_call(
        kernel,
        out_shape=jax.ShapeDtypeStruct((P, out_H, out_W), x.dtype),
        grid=(num_steps,),
        in_specs=[pl.BlockSpec((tile_p, H, W), lambda i: (i, 0, 0))],
        out_specs=pl.BlockSpec((tile_p, out_H, out_W), lambda i: (i, 0, 0)),
        compiler_params=pltpu.CompilerParams(
            dimension_semantics=("parallel",),
            vmem_limit_bytes=32 * 1024 * 1024),
        cost_estimate=pl.CostEstimate(flops=0, transcendentals=0,
                                      bytes_accessed=bytes_accessed),
    )(x_flat)

    return out_flat.reshape(B, C, out_H, out_W)


if __name__ == "__main__":
    key = jax.random.PRNGKey(0)
    B, C, H, W = 2, 4, 16, 16
    x = jax.random.normal(key, (B, C, H, W), dtype=jnp.float32)

    # Case 1: SamePad2d(kernel_size=3, stride=1) -> symmetric pad of 1 on H and W.
    out = jax.block_until_ready(same_pad_2d(x, 3, 1))
    ref = jnp.pad(x, ((0, 0), (0, 0), (1, 1), (1, 1)))
    assert out.shape == ref.shape, (out.shape, ref.shape)
    assert jnp.allclose(out, ref), "mismatch vs reference padding (k=3, s=1)"

    # Case 2: SamePad2d(kernel_size=3, stride=2) -> asymmetric pad (0 left/top, 1 right/bottom).
    out2 = jax.block_until_ready(same_pad_2d(x, 3, 2))
    ref2 = jnp.pad(x, ((0, 0), (0, 0), (0, 1), (0, 1)))
    assert out2.shape == ref2.shape, (out2.shape, ref2.shape)
    assert jnp.allclose(out2, ref2), "mismatch vs reference padding (k=3, s=2)"

    # Case 3: SamePad2d(kernel_size=1, stride=1) -> no padding, early-out path.
    out3 = jax.block_until_ready(same_pad_2d(x, 1, 1))
    assert out3.shape == x.shape
    assert jnp.allclose(out3, x), "early-out path must be identity"

    print("KERNEL_OK")
</pallas_src>

<mosaic_0001>
module attributes {stable_mosaic.version = 11 : i64} {
  func.func @_samepad2d_kernel(%arg0: i32, %arg1: memref<4x16x16xf32, #tpu.memory_space<vmem>>, %arg2: memref<4x18x18xf32, #tpu.memory_space<vmem>>) attributes {dimension_semantics = [#tpu.dimension_semantics<parallel>], iteration_bounds = array<i64: 2>, scalar_prefetch = 0 : i64, scratch_operands = 0 : i64, tpu.core_type = #tpu.core_type<tc>, window_params = [{transform_indices = @transform_0, window_bounds = array<i64: 4, 16, 16>}, {transform_indices = @transform_1, window_bounds = array<i64: 4, 18, 18>}]} {
    %c0 = arith.constant 0 : index
    %c0_0 = arith.constant 0 : index
    %c0_1 = arith.constant 0 : index
    %0 = vector.load %arg1[%c0, %c0_0, %c0_1] : memref<4x16x16xf32, #tpu.memory_space<vmem>>, vector<4x16x16xf32>
    %cst = arith.constant 0.000000e+00 : f32
    %1 = vector.broadcast %cst : f32 to vector<4x16x1xf32>
    %cst_2 = arith.constant 0.000000e+00 : f32
    %2 = vector.broadcast %cst_2 : f32 to vector<4x16x1xf32>
    %3 = tpu.concatenate %1, %0, %2 in 2 : vector<4x16x1xf32>, vector<4x16x16xf32>, vector<4x16x1xf32> -> vector<4x16x18xf32>
    %cst_3 = arith.constant 0.000000e+00 : f32
    %4 = vector.broadcast %cst_3 : f32 to vector<4x1x18xf32>
    %cst_4 = arith.constant 0.000000e+00 : f32
    %5 = vector.broadcast %cst_4 : f32 to vector<4x1x18xf32>
    %6 = tpu.concatenate %4, %3, %5 in 1 : vector<4x1x18xf32>, vector<4x16x18xf32>, vector<4x1x18xf32> -> vector<4x18x18xf32>
    %c0_5 = arith.constant 0 : index
    %c0_6 = arith.constant 0 : index
    %c0_7 = arith.constant 0 : index
    %7 = vector.load %arg2[%c0_5, %c0_6, %c0_7] : memref<4x18x18xf32, #tpu.memory_space<vmem>>, vector<4x18x18xf32>
    tpu.vector_store %arg2[%c0_5, %c0_6, %c0_7], %6 {strides = array<i32>} : memref<4x18x18xf32, #tpu.memory_space<vmem>>, vector<4x18x18xf32>,
    return
  }
  func.func @transform_0(%arg0: i32) -> (i32, i32, i32) {
    %c0_i32 = arith.constant 0 : i32
    %c0_i32_0 = arith.constant 0 : i32
    %c0_i32_1 = arith.constant 0 : i32
    return %arg0, %c0_i32, %c0_i32_0 : i32, i32, i32
  }
  func.func @transform_1(%arg0: i32) -> (i32, i32, i32) {
    %c0_i32 = arith.constant 0 : i32
    %c0_i32_0 = arith.constant 0 : i32
    %c0_i32_1 = arith.constant 0 : i32
    return %arg0, %c0_i32, %c0_i32_0 : i32, i32, i32
  }
}

</mosaic_0001>

<bundles_post_ra>
// kernel: tpu_custom_call.1
= control target key start
LH: loop header
LB: loop body
LE: loop exit
PB: predicated region body
PF: predicated region fallthrough
CT: control target
= control target key end

     0   :  { %6 = vsyncpa [#allocation3], 0  ;;  %s609_s0 = inlined_call_operand.hbm [shape: f32[8,16,16], index: 0, kind: input, shape index: {}]   ;;  %s610_s1 = inlined_call_operand.vmem [shape: f32[8,18,18], index: 1, kind: output, shape index: {}]  }
   0x1   :  { %8 = vsyncpa [#allocation3 + $0x1], 0  ;;  %s464_s6 = smov 0   ;;  %s466_s7 = smov 0  }
   0x2   :  { %s468_s8 = smov 0   ;;  %s470_s9 = smov 0  }
   0x3 LB: > { %s326_s10 = sadd.s32 4294967295, %s449_s9   ;;  %s484_s11 = sadd.s32 1, %s449_s9   ;;  %s449_s9 = sphi %s470_s9, %s617_s9   ;;  %s445_s8 = sphi %s468_s8, %s616_s8   ;;  %s441_s7 = sphi %s466_s7, %s615_s7   ;;  %s437_s6 = sphi %s464_s6, %s614_s6  }
   0x4   : > { %s18_s12 = ssub.s32 %s449_s9, %s484_s11  ;;  %s21_s13 = sadd.s32 1, %s445_s8 }
   0x5   : > { %p19_p0 = scmp.eq.s32.totalorder %s18_s12, 0  ;;  %p28_p1 = scmp.ne.s32.totalorder %s445_s8, %s441_s7 }
   0x6   : > { %p29_p2 = scmp.eq.s32.totalorder %s449_s9, 0  ;;  %p34_p3 = scmp.ne.s32.totalorder %s441_s7, %s437_s6 }
   0x7   : > { %s494_s14 = scalar_select %p19_p0, %s445_s8, %s21_s13  }
   0x8   : > { %p496_p4 = por %p29_p2, %p28_p1  ;;  %p35_p5 = scmp.eq.s32.totalorder %s326_s10, 0 }
   0x9   : > { %p349_p6 = scmp.lt.s32.totalorder %s449_s9, 2  ;;  %s84_s17 = sand.u32 1, %s445_s8  }
   0xa   : > { %p503_p7 = por %p35_p5, %p34_p3  ;;  %s330_s18 = sshll.u32 %s84_s17, 6 }
   0xb   : > { %s341_s19 = sshll.u32 %s449_s9, 6  ;;  %s88_s23 = scalar_lea.vmem [#allocation2], %s330_s18 }
   0xc   : > { %s94_s22 = scalar_lea.hbm %s609_s0, %s341_s19  ;;  %s97_s24 = sshll.u32 %s88_s23, 4  ;;  %s98_s24 = int_to_ptr.vmem [resolvable:$true] %s97_s24 }
   0xd   : > { %s95_s25 = sshll.u32 %s94_s22, 4  ;;  %p514_p8 = pnand %p349_p6, %p496_p4  ;;  %s96_s25 = int_to_ptr.hbm [resolvable:$true] %s95_s25 }
   0xe   : > { %p334_p9 = scmp.ge.s32.totalorder %s449_s9, 1  ;;  %s85_s27 = scalar_lea.sflag [#allocation3], %s84_s17 }
   0xf   : > { %s385_s28 = sshra.s32 %s96_s25, 4  ;;  %p389_p11 = pneg %p514_p8  ;;  %s386_s28 = int_to_ptr.hbm [resolvable:$true] %s385_s28 }
  0x10   : > { %s387_s29 = scalar_lea.hbm %s386_s28, 64  ;;  %s392_s3 = scalar_lea.hbm %s609_s0, 128 }
  0x11   : > { %p388_p10 = scmp.ne.s32.totalorder %s386_s28, %s387_s29  ;;  %p393_p0 = scmp.lt.s32.totalorder %s386_s28, %s609_s0 }
  0x12   : > { %p394_p1 = scmp.lt.s32.totalorder %s392_s3, %s387_s29 }
  0x13   : > { %p390_p12 = pnand %p389_p11, %p388_p10 }
  0x14   : > { %p395_p2 = por %p394_p1, %p393_p0 }
  0x15   : > { %p391_p13 = pneg %p390_p12 }
  0x17   : > { %p396_p3 = pnand %p395_p2, %p391_p13 }
  0x19   : > { %399 = shalt.err (!%p396_p3)
}
  0x1a   : > { %s451_s6 = smov 128   ;;  %s452_s12 = smov 8  }
  0x1b   : > { %348 = dma.hbm_to_vmem [thread:$0]  (!%p514_p8), %s96_s25, 1024, %s98_s24, %s85_s27, %s451_s6, %s451_s6, %s452_s12  }
  0x1c   : > { %p105_p4 = scmp.lt.s32.totalorder %s449_s9, 3 }
  0x1e   : > { %p106_p5 = pnand %p334_p9, %p105_p4 }
  0x1f   : > { %s111_s13 = sand.u32 (!%p106_p5), 1, %s441_s7  }
  0x20   : > { %109 = sbr.rel (%p106_p5) target bundleno = 178 (0xb2), region = 24  ;;  %s335_s15 = sshll.u32 (!%p106_p5), %s111_s13, 6 }
  0x21   : > { %s112_s17 = scalar_lea.sflag (!%p106_p5), [#allocation3], %s111_s13  ;;  %s115_s18 = scalar_lea.vmem (!%p106_p5), [#allocation2], %s335_s15 }
  0x25   : > { %432 = dma.done.wait (%p503_p7), %s112_s17, 1024  }
  0x26   : > { %434 = vsyncadd (%p503_p7), %s112_s17, 4294966272  ;;  %v146_v0 = vld [vmem:[%s115_s18 + $0x10] sm:$0xff]  ;;  %v144_v1 = vld [vmem:[%s115_s18] sm:$0xff]  ;;  %s453_s19 = smov 1   ;;  %s336_s16 = sshll.u32 %s326_s10, 2  ;;  %vm184_vm0 = vcmask 7168  }
  0x27   : > { %164 = vrot.lane.b32.xlu1 %v146_v0, %s453_s19  ;;  %160 = vrot.lane.b32.xlu0 %v144_v1, %s453_s19  ;;  %v148_v2 = vld [vmem:[%s115_s18 + $0x20] sm:$0xff]  ;;  %v147_v3 = vld [vmem:[%s115_s18 + $0x18] sm:$0xff]  ;;  %p138_p6 = scmp.lt.s32.totalorder %s336_s16, 7  ;;  %vm193_vm1 = vcmask 138240   ;;  %vm210_vm2 = vcmask 1040384   ;;  %vm243_vm3 = vcmask 146432  }
  0x28   : > { %168 = vrot.lane.b32.xlu2 %v148_v2, %s453_s19  ;;  %v145_v4 = vld [vmem:[%s115_s18 + $0x8] sm:$0xff]  ;;  %v151_v6 = vld [vmem:[%s115_s18 + $0x38] sm:$0xff]  ;;  %v150_v7 = vld [vmem:[%s115_s18 + $0x30] sm:$0xff]  ;;  %vm246_vm4 = vcmask 140288  }
  0x29   : > { %v149_v5 = vld [vmem:[%s115_s18 + $0x28] sm:$0xff]  ;;  %s619_s16 = smov (!%p138_p6, %s336_s16), 7 }
  0x2a   : > { %s342_s20 = smul.u32 24, %s619_s16 }
  0x2c   : > { %s548_s21 = scalar_lea.vmem %s610_s1, %s342_s20 }
  0x2f   : > { %166 = vrot.lane.b32.xlu1 %v147_v3, %s453_s19  ;;  %162 = vrot.lane.b32.xlu0 %v145_v4, %s453_s19 }
  0x30   : > { %170 = vrot.lane.b32.xlu2 %v149_v5, %s453_s19 }
  0x37   : > { %174 = vrot.lane.b32.xlu1 %v151_v6, %s453_s19  ;;  %172 = vrot.lane.b32.xlu0 %v150_v7, %s453_s19 }
  0x82   : > { %v169_v8 = vpop.permute.xlu2 %168 }
  0x83   : > { %v189_v9 = vsel %vm184_vm0, 0.0, %v169_v8 }
  0x84   : > { %v198_v10 = vsel %vm193_vm1, %v189_v9, 0.0 }
  0x85   : > { %v217_v13 = vrot.slane %v198_v10, 7 }
  0x87   : > { %v237_v21 = vsel %vm210_vm2, 0.0, %v217_v13 }
  0x88   : > { %251 = vst.msk [vmem:[%s548_s21 + $0x30] sm:$0xff] %vm243_vm3, %v237_v21 }
  0x8a   : > { %v171_v20 = vpop.permute.xlu2 %170 }
  0x8b   : > { %v190_v24 = vsel %vm184_vm0, 0.0, %v171_v20 }
  0x8c   : > { %v199_v29 = vsel %vm193_vm1, %v190_v24, 0.0 }
  0x8d   : > { %v218_v34 = vrot.slane %v199_v29, 7 }
  0x8f   : > { %v241_v39 = vsel %vm210_vm2, %v218_v34, 0.0  ;;  %v219_v42 = vsel %vm210_vm2, %v217_v13, %v218_v34 }
  0x90   : > { %252 = vst.msk [vmem:[%s548_s21 + $0x38] sm:$0xff] %vm243_vm3, %v219_v42 }
  0x91   : > { %253 = vst.msk [vmem:[%s548_s21 + $0x40] sm:$0x3] %vm246_vm4, %v241_v39 }
  0x99   : > { %v165_v11 = vpop.permute.xlu1 %164  ;;  %v161_v12 = vpop.permute.xlu0 %160 }
  0x9a   : > { %v187_v14 = vsel %vm184_vm0, 0.0, %v165_v11  ;;  %v185_v15 = vsel %vm184_vm0, 0.0, %v161_v12 }
  0x9b   : > { %v196_v16 = vsel %vm193_vm1, %v187_v14, 0.0  ;;  %v194_v17 = vsel %vm193_vm1, %v185_v15, 0.0 }
  0x9c   : > { %v214_v18 = vrot.slane %v196_v16, 7  ;;  %v211_v19 = vrot.slane %v194_v17, 7 }
  0x9e   : > { %v236_v22 = vsel %vm210_vm2, 0.0, %v214_v18  ;;  %v235_v23 = vsel %vm210_vm2, 0.0, %v211_v19 }
  0x9f   : > { %244 = vst.msk [vmem:[%s548_s21] sm:$0xff] %vm243_vm3, %v235_v23 }
  0xa0   : > { %248 = vst.msk [vmem:[%s548_s21 + $0x18] sm:$0xff] %vm243_vm3, %v236_v22 }
  0xa1   : > { %v167_v25 = vpop.permute.xlu1 %166  ;;  %v163_v26 = vpop.permute.xlu0 %162 }
  0xa2   : > { %v188_v27 = vsel %vm184_vm0, 0.0, %v167_v25  ;;  %v186_v28 = vsel %vm184_vm0, 0.0, %v163_v26 }
  0xa3   : > { %v197_v30 = vsel %vm193_vm1, %v188_v27, 0.0  ;;  %v195_v31 = vsel %vm193_vm1, %v186_v28, 0.0 }
  0xa4   : > { %v215_v32 = vrot.slane %v197_v30, 7  ;;  %v212_v33 = vrot.slane %v195_v31, 7 }
  0xa6   : > { %v216_v35 = vsel %vm210_vm2, %v214_v18, %v215_v32  ;;  %v213_v36 = vsel %vm210_vm2, %v211_v19, %v212_v33  ;;  %v239_v37 = vsel %vm210_vm2, %v212_v33, 0.0  ;;  %v240_v38 = vsel %vm210_vm2, %v215_v32, 0.0 }
  0xa7   : > { %245 = vst.msk [vmem:[%s548_s21 + $0x8] sm:$0xff] %vm243_vm3, %v213_v36 }
  0xa8   : > { %247 = vst.msk [vmem:[%s548_s21 + $0x10] sm:$0x3] %vm246_vm4, %v239_v37 }
  0xa9   : > { %249 = vst.msk [vmem:[%s548_s21 + $0x20] sm:$0xff] %vm243_vm3, %v216_v35  ;;  %v175_v40 = vpop.permute.xlu1 %174  ;;  %v173_v41 = vpop.permute.xlu0 %172 }
  0xaa   : > { %250 = vst.msk [vmem:[%s548_s21 + $0x28] sm:$0x3] %vm246_vm4, %v240_v38  ;;  %v192_v43 = vsel %vm184_vm0, 0.0, %v175_v40  ;;  %v191_v44 = vsel %vm184_vm0, 0.0, %v173_v41 }
  0xab   : > { %v201_v45 = vsel %vm193_vm1, %v192_v43, 0.0  ;;  %v200_v46 = vsel %vm193_vm1, %v191_v44, 0.0 }
  0xac   : > { %v221_v47 = vrot.slane %v201_v45, 7  ;;  %v220_v48 = vrot.slane %v200_v46, 7 }
  0xae   : > { %v242_v49 = vsel %vm210_vm2, %v221_v47, 0.0  ;;  %v222_v50 = vsel %vm210_vm2, %v220_v48, %v221_v47  ;;  %v238_v51 = vsel %vm210_vm2, 0.0, %v220_v48 }
  0xaf   : > { %256 = vst.msk [vmem:[%s548_s21 + $0x58] sm:$0x3] %vm246_vm4, %v242_v49 }
  0xb0   : > { %254 = vst.msk [vmem:[%s548_s21 + $0x48] sm:$0xff] %vm243_vm3, %v238_v51 }
  0xb1   : > { %255 = vst.msk [vmem:[%s548_s21 + $0x50] sm:$0xff] %vm243_vm3, %v222_v50 }
  0xb2 PF: > { %p11_p7 = scmp.ge.s32.totalorder %s484_s11, 4   ;;  %s614_s6 = smov %s441_s7 }
  0xb3   : > { %s615_s7 = smov %s445_s8  ;;  %s616_s8 = smov %s494_s14 }
  0xb4   : > { %s617_s9 = smov %s484_s11  ;;  %13 = sbr.rel (!%p11_p7) target bundleno = 3 (0x3), region = 64 }
  0xb9   :  { %281 = vsyncpa [#allocation3], 1 }
  0xba   :  { %283 = vsyncpa [#allocation3 + $0x1], 1 }

</bundles_post_ra>
